<compile_context>
chip_gen: v6e
topology: v6e:2x2x1
jax: 0.10.0
libtpu: 0.0.40
codegen_flags: <defaults>
</compile_context>

<pallas_src>
import functools

import jax
import jax.numpy as jnp
from jax.experimental import pallas as pl
from jax.experimental.pallas import tpu as pltpu

EPS = 1e-5      # torch.nn.LayerNorm default
LANE = 128      # TPU lane width


def prenorm_linear_kernel(x_ref, gamma_ref, beta_ref, w_ref, b_ref, o_ref,
                          *, d_actual, d_padded):
    # x_ref: (TM, Dp) f32 rows of the flattened, zero-padded (B*N, D) input.
    x = x_ref[...].astype(jnp.float32)   # no-op for f32 input, upcast if bf16

    # --- LayerNorm over the real D columns (padded columns are zero) ---
    inv_d = jnp.float32(1.0 / d_actual)
    mean = jnp.sum(x, axis=-1, keepdims=True) * inv_d
    centered = x - mean
    if d_actual != d_padded:
        # Zero the padded tail so it does not contribute to the variance.
        col = jax.lax.broadcasted_iota(jnp.int32, x.shape, dimension=1)
        centered = jnp.where(col < d_actual, centered, 0.0)
    var = jnp.sum(centered * centered, axis=-1, keepdims=True) * inv_d
    xn = centered * jax.lax.rsqrt(var + EPS)
    # Padded gamma/beta are zero -> xn is exactly zero on padded D columns.
    xn = xn * gamma_ref[...] + beta_ref[...]

    # --- fn := Linear(D -> H): bf16 operands on the MXU, f32 accumulate ---
    y = jnp.dot(xn.astype(jnp.bfloat16), w_ref[...],
                preferred_element_type=jnp.float32) + b_ref[...]
    o_ref[...] = y.astype(o_ref.dtype)


def prenorm_forward(x, gamma, beta, w, b, *, tm=128):
    """x: (B, N, D) f32; gamma/beta: (1, D); w: (D, H); b: (1, H) -> (B, N, H)."""
    B, N, D = x.shape
    H = w.shape[1]
    M = B * N

    # Pad to lane-dense / tile-aligned shapes.
    Mp = pl.cdiv(M, tm) * tm
    Dp = pl.cdiv(D, LANE) * LANE
    Hp = pl.cdiv(H, LANE) * LANE

    x2 = jnp.pad(x.reshape(M, D), ((0, Mp - M), (0, Dp - D)))
    gamma_p = jnp.pad(gamma.reshape(1, D), ((0, 0), (0, Dp - D)))
    beta_p = jnp.pad(beta.reshape(1, D), ((0, 0), (0, Dp - D)))
    # bf16 weights: halves HBM/VMEM traffic and feeds the MXU at full rate.
    w_p = jnp.pad(w, ((0, Dp - D), (0, Hp - H))).astype(jnp.bfloat16)
    b_p = jnp.pad(b.reshape(1, H), ((0, 0), (0, Hp - H)))

    kernel = functools.partial(prenorm_linear_kernel, d_actual=D, d_padded=Dp)

    out = pl.pallas_call(
        kernel,
        out_shape=jax.ShapeDtypeStruct((Mp, Hp), x.dtype),
        grid=(Mp // tm,),
        in_specs=[
            pl.BlockSpec((tm, Dp), lambda i: (i, 0)),   # x rows, tiled over M
            pl.BlockSpec((1, Dp), lambda i: (0, 0)),    # LayerNorm weight (resident)
            pl.BlockSpec((1, Dp), lambda i: (0, 0)),    # LayerNorm bias (resident)
            pl.BlockSpec((Dp, Hp), lambda i: (0, 0)),   # fn (Linear) weight (resident)
            pl.BlockSpec((1, Hp), lambda i: (0, 0)),    # fn (Linear) bias (resident)
        ],
        out_specs=pl.BlockSpec((tm, Hp), lambda i: (i, 0)),
        compiler_params=pltpu.CompilerParams(
            dimension_semantics=("parallel",),
            vmem_limit_bytes=32 * 1024 * 1024,
        ),
    )(x2, gamma_p, beta_p, w_p, b_p)

    # Drop padding and restore (B, N, H).
    return out[:M, :H].reshape(B, N, H)


def prenorm_reference(x, gamma, beta, w, b):
    mean = jnp.mean(x, axis=-1, keepdims=True)
    var = jnp.mean((x - mean) ** 2, axis=-1, keepdims=True)
    xn = (x - mean) * jax.lax.rsqrt(var + EPS)
    xn = xn * gamma[0] + beta[0]
    return jnp.einsum("bnd,dh->bnh", xn, w) + b[0]


if __name__ == "__main__":
    B, N, D, H = 2, 8, 32, 64

    key = jax.random.PRNGKey(0)
    kx, kg, kb, kw, kbi = jax.random.split(key, 5)

    x = jax.random.normal(kx, (B, N, D), dtype=jnp.float32)
    # LayerNorm params (torch default is ones/zeros; perturb to exercise affine)
    gamma = 1.0 + 0.1 * jax.random.normal(kg, (1, D), dtype=jnp.float32)
    beta = 0.1 * jax.random.normal(kb, (1, D), dtype=jnp.float32)
    # fn := Linear(D, H) params
    w = jax.random.normal(kw, (D, H), dtype=jnp.float32) * (1.0 / jnp.sqrt(D))
    b = 0.1 * jax.random.normal(kbi, (1, H), dtype=jnp.float32)

    out = prenorm_forward(x, gamma, beta, w, b)
    out = jax.block_until_ready(out)

    ref = prenorm_reference(x, gamma, beta, w, b)
    assert out.shape == (B, N, H)
    # Tolerance relaxed for bf16 matmul operands (f32 accumulate).
    assert jnp.allclose(out, ref, atol=2e-2, rtol=2e-2), "mismatch vs reference"

    print("KERNEL_OK")
</pallas_src>

<mosaic_0001>
module attributes {stable_mosaic.version = 11 : i64} {
  func.func @prenorm_linear_kernel(%arg0: i32, %arg1: memref<128x128xf32, #tpu.memory_space<vmem>>, %arg2: memref<1x128xf32, #tpu.memory_space<vmem>>, %arg3: memref<1x128xf32, #tpu.memory_space<vmem>>, %arg4: memref<128x128xbf16, #tpu.memory_space<vmem>>, %arg5: memref<1x128xf32, #tpu.memory_space<vmem>>, %arg6: memref<128x128xf32, #tpu.memory_space<vmem>>) attributes {dimension_semantics = [#tpu.dimension_semantics<parallel>], iteration_bounds = array<i64: 1>, scalar_prefetch = 0 : i64, scratch_operands = 0 : i64, tpu.core_type = #tpu.core_type<tc>, window_params = [{transform_indices = @transform_0, window_bounds = array<i64: 128, 128>}, {pipeline_mode = #tpu.pipeline_mode<synchronous>, transform_indices = @transform_1, window_bounds = array<i64: 1, 128>}, {pipeline_mode = #tpu.pipeline_mode<synchronous>, transform_indices = @transform_2, window_bounds = array<i64: 1, 128>}, {pipeline_mode = #tpu.pipeline_mode<synchronous>, transform_indices = @transform_3, window_bounds = array<i64: 128, 128>}, {pipeline_mode = #tpu.pipeline_mode<synchronous>, transform_indices = @transform_4, window_bounds = array<i64: 1, 128>}, {transform_indices = @transform_5, window_bounds = array<i64: 128, 128>}]} {
    %c0 = arith.constant 0 : index
    %c0_0 = arith.constant 0 : index
    %0 = vector.load %arg1[%c0, %c0_0] : memref<128x128xf32, #tpu.memory_space<vmem>>, vector<128x128xf32>
    %cst = arith.constant dense<0.000000e+00> : vector<128xf32>
    %1 = vector.multi_reduction <add>, %0, %cst [1] : vector<128x128xf32> to vector<128xf32>
    %2 = vector.shape_cast %1 : vector<128xf32> to vector<128x1xf32>
    %cst_1 = arith.constant 3.125000e-02 : f32
    %3 = vector.broadcast %cst_1 : f32 to vector<128x1xf32>
    %4 = arith.mulf %2, %3 : vector<128x1xf32>
    %5 = vector.broadcast %4 : vector<128x1xf32> to vector<128x128xf32>
    %6 = arith.subf %0, %5 : vector<128x128xf32>
    %7 = tpu.iota {dimensions = array<i32: 1>} : vector<128x128xi32>
    %c32_i32 = arith.constant 32 : i32
    %8 = vector.broadcast %c32_i32 : i32 to vector<128x128xi32>
    %9 = arith.cmpi slt, %7, %8 : vector<128x128xi32>
    %cst_2 = arith.constant 0.000000e+00 : f32
    %10 = vector.broadcast %cst_2 : f32 to vector<128x128xf32>
    %11 = arith.select %9, %6, %10 : vector<128x128xi1>, vector<128x128xf32>
    %12 = arith.mulf %11, %11 : vector<128x128xf32>
    %cst_3 = arith.constant dense<0.000000e+00> : vector<128xf32>
    %13 = vector.multi_reduction <add>, %12, %cst_3 [1] : vector<128x128xf32> to vector<128xf32>
    %14 = vector.shape_cast %13 : vector<128xf32> to vector<128x1xf32>
    %cst_4 = arith.constant 3.125000e-02 : f32
    %15 = vector.broadcast %cst_4 : f32 to vector<128x1xf32>
    %16 = arith.mulf %14, %15 : vector<128x1xf32>
    %cst_5 = arith.constant 9.99999974E-6 : f32
    %17 = vector.broadcast %cst_5 : f32 to vector<128x1xf32>
    %18 = arith.addf %16, %17 : vector<128x1xf32>
    %19 = math.rsqrt %18 : vector<128x1xf32>
    %20 = vector.broadcast %19 : vector<128x1xf32> to vector<128x128xf32>
    %21 = arith.mulf %11, %20 : vector<128x128xf32>
    %c0_6 = arith.constant 0 : index
    %c0_7 = arith.constant 0 : index
    %22 = vector.load %arg2[%c0_6, %c0_7] : memref<1x128xf32, #tpu.memory_space<vmem>>, vector<1x128xf32>
    %23 = vector.broadcast %22 : vector<1x128xf32> to vector<128x128xf32>
    %24 = arith.mulf %21, %23 : vector<128x128xf32>
    %c0_8 = arith.constant 0 : index
    %c0_9 = arith.constant 0 : index
    %25 = vector.load %arg3[%c0_8, %c0_9] : memref<1x128xf32, #tpu.memory_space<vmem>>, vector<1x128xf32>
    %26 = vector.broadcast %25 : vector<1x128xf32> to vector<128x128xf32>
    %27 = arith.addf %24, %26 : vector<128x128xf32>
    %28 = arith.truncf %27 : vector<128x128xf32> to vector<128x128xbf16>
    %c0_10 = arith.constant 0 : index
    %c0_11 = arith.constant 0 : index
    %29 = vector.load %arg4[%c0_10, %c0_11] : memref<128x128xbf16, #tpu.memory_space<vmem>>, vector<128x128xbf16>
    %cst_12 = arith.constant dense<0.000000e+00> : vector<128x128xf32>
    %30 = tpu.matmul %28, %29, %cst_12 {dimension_numbers = #tpu.dot_dimension_numbers<[1], [0], [0], [1], [0, 0, 1, 1], [], []>} : vector<128x128xbf16>, vector<128x128xbf16>, vector<128x128xf32> -> vector<128x128xf32>
    %c0_13 = arith.constant 0 : index
    %c0_14 = arith.constant 0 : index
    %31 = vector.load %arg5[%c0_13, %c0_14] : memref<1x128xf32, #tpu.memory_space<vmem>>, vector<1x128xf32>
    %32 = vector.broadcast %31 : vector<1x128xf32> to vector<128x128xf32>
    %33 = arith.addf %30, %32 : vector<128x128xf32>
    %c0_15 = arith.constant 0 : index
    %c0_16 = arith.constant 0 : index
    %34 = vector.load %arg6[%c0_15, %c0_16] : memref<128x128xf32, #tpu.memory_space<vmem>>, vector<128x128xf32>
    tpu.vector_store %arg6[%c0_15, %c0_16], %33 {strides = array<i32>} : memref<128x128xf32, #tpu.memory_space<vmem>>, vector<128x128xf32>,
    return
  }
  func.func @transform_0(%arg0: i32) -> (i32, i32) {
    %c0_i32 = arith.constant 0 : i32
    %c0_i32_0 = arith.constant 0 : i32
    return %arg0, %c0_i32 : i32, i32
  }
  func.func @transform_1(%arg0: i32) -> (i32, i32) {
    %c0_i32 = arith.constant 0 : i32
    %c0_i32_0 = arith.constant 0 : i32
    %c0_i32_1 = arith.constant 0 : i32
    return %c0_i32, %c0_i32_0 : i32, i32
  }
  func.func @transform_2(%arg0: i32) -> (i32, i32) {
    %c0_i32 = arith.constant 0 : i32
    %c0_i32_0 = arith.constant 0 : i32
    %c0_i32_1 = arith.constant 0 : i32
    return %c0_i32, %c0_i32_0 : i32, i32
  }
  func.func @transform_3(%arg0: i32) -> (i32, i32) {
    %c0_i32 = arith.constant 0 : i32
    %c0_i32_0 = arith.constant 0 : i32
    %c0_i32_1 = arith.constant 0 : i32
    return %c0_i32, %c0_i32_0 : i32, i32
  }
  func.func @transform_4(%arg0: i32) -> (i32, i32) {
    %c0_i32 = arith.constant 0 : i32
    %c0_i32_0 = arith.constant 0 : i32
    %c0_i32_1 = arith.constant 0 : i32
    return %c0_i32, %c0_i32_0 : i32, i32
  }
  func.func @transform_5(%arg0: i32) -> (i32, i32) {
    %c0_i32 = arith.constant 0 : i32
    %c0_i32_0 = arith.constant 0 : i32
    return %arg0, %c0_i32 : i32, i32
  }
}

</mosaic_0001>

<bundles_post_ra>
// kernel: tpu_custom_call.1
= control target key start
LH: loop header
LB: loop body
LE: loop exit
PB: predicated region body
PF: predicated region fallthrough
CT: control target
= control target key end

     0   :  { %10 = vsyncpa [#allocation3], 0  ;;  %s961_s0 = inlined_call_operand.hbm [shape: f32[128,128], index: 0, kind: input, shape index: {}]   ;;  %s962_s1 = inlined_call_operand.vmem [shape: f32[1,128], index: 1, kind: input, shape index: {}]   ;;  %s963_s2 = inlined_call_operand.vmem [shape: f32[1,128], index: 2, kind: input, shape index: {}]   ;;  %s964_s3 = inlined_call_operand.hbm [shape: bf16[128,128], index: 3, kind: input, shape index: {}]   ;;  %s965_s4 = inlined_call_operand.vmem [shape: f32[1,128], index: 4, kind: input, shape index: {}]   ;;  %s966_s5 = inlined_call_operand.hbm [shape: f32[128,128], index: 5, kind: output, shape index: {}]  }
   0x1   :  { %11 = vsyncpa [#allocation6], 0 }
   0x2   :  { %12 = vsyncpa [#allocation4], 0  ;;  %s705_s18 = smov [#allocation2]  }
   0x3   :  { %s18_s19 = sshll.u32 %s705_s18, 4  ;;  %s19_s19 = int_to_ptr.vmem [resolvable:$true] %s18_s19 }
   0x4   :  { %s647_s20 = scalar_lea.vmem %s19_s19, 2048  ;;  %p652_p1 = scmp.lt.s32.totalorder %s19_s19, %s19_s19 }
   0x5   :  { %p648_p0 = scmp.ne.s32.totalorder %s19_s19, %s647_s20  ;;  %p653_p2 = scmp.lt.s32.totalorder %s647_s20, %s647_s20 }
   0x7   :  { %p654_p3 = por %p653_p2, %p652_p1 }
   0x9   :  { %p655_p4 = pnand %p654_p3, %p648_p0 }
   0xb   :  { %658 = shalt.err (!%p655_p4)
}
   0xc   :  { %s706_s21 = smov 128   ;;  %s707_s22 = smov 8  }
   0xd   :  { %24 = dma.hbm_to_vmem [thread:$0]  %s961_s0, 2048, %s19_s19, [#allocation3], %s706_s21, %s706_s21, %s707_s22  }
   0xe   :  { %s708_s25 = smov [#allocation5]  }
   0xf   :  { %s34_s26 = sshll.u32 %s708_s25, 4  ;;  %s35_s26 = int_to_ptr.vmem [resolvable:$true] %s34_s26 }
  0x10   :  { %s667_s27 = scalar_lea.vmem %s35_s26, 1024  ;;  %p672_p6 = scmp.lt.s32.totalorder %s35_s26, %s35_s26 }
  0x11   :  { %p668_p5 = scmp.ne.s32.totalorder %s35_s26, %s667_s27  ;;  %p673_p7 = scmp.lt.s32.totalorder %s667_s27, %s667_s27 }
  0x13   :  { %p674_p8 = por %p673_p7, %p672_p6 }
  0x15   :  { %p675_p9 = pnand %p674_p8, %p668_p5 }
  0x17   :  { %678 = shalt.err (!%p675_p9)
}
  0x18   :  { %s709_s28 = smov 64   ;;  %s710_s29 = smov 4  }
  0x19   :  { %40 = dma.hbm_to_vmem [thread:$0]  %s964_s3, 1024, %s35_s26, [#allocation6], %s709_s28, %s709_s28, %s710_s29  }
  0x1a   :  { %699 = dma.done.wait [#allocation3], 2048  }
  0x1b   :  { %700 = vsyncadd [#allocation3], 4294965248 }
  0x1c   :  { %701 = dma.done.wait [#allocation6], 1024  }
  0x1d   :  { %702 = vsyncadd [#allocation6], 4294966272  ;;  %v50_v0 = vld [vmem:[#allocation2] sm:$0xff]  ;;  %v51_v2 = vld [vmem:[#allocation2 + $0x8] sm:$0xff]  ;;  %v130_v16 = vlaneseq }
  0x1e   :  { %v58_v1 = vld [vmem:[#allocation2 + $0x40] sm:$0xff]  ;;  %66 = vadd.xlane.f32.xlu0 %v50_v0  ;;  %v59_v3 = vld [vmem:[#allocation2 + $0x48] sm:$0xff]  ;;  %v751_v4 = vld [vmem:[#allocation2 + $0x10] sm:$0xff] }
  0x1f   :  { %82 = vadd.xlane.f32.xlu1 %v58_v1  ;;  %v53_v5 = vld [vmem:[#allocation2 + $0x18] sm:$0xff]  ;;  %v753_v6 = vld [vmem:[#allocation2 + $0x50] sm:$0xff]  ;;  %v760_v8 = vld [vmem:[#allocation2 + $0x20] sm:$0xff]  ;;  %v784_v17 = vand.u32 127, %v130_v16 }
  0x20   :  { %v756_v7 = vld [vmem:[#allocation2 + $0x58] sm:$0xff]  ;;  %v762_v9 = vld [vmem:[#allocation2 + $0x28] sm:$0xff]  ;;  %v766_v10 = vld [vmem:[#allocation2 + $0x60] sm:$0xff] }
  0x21   :  { %v768_v11 = vld [vmem:[#allocation2 + $0x68] sm:$0xff]  ;;  %v772_v12 = vld [vmem:[#allocation2 + $0x30] sm:$0xff]  ;;  %v774_v13 = vld [vmem:[#allocation2 + $0x38] sm:$0xff]  ;;  %vm132_vm0 = vcmp.lt.s32.totalorder %v784_v17, 32 }
  0x22   :  { %68 = vadd.xlane.f32.xlu0 %v51_v2  ;;  %v778_v14 = vld [vmem:[#allocation2 + $0x70] sm:$0xff]  ;;  %v780_v15 = vld [vmem:[#allocation2 + $0x78] sm:$0xff] }
  0x23   :  { %84 = vadd.xlane.f32.xlu1 %v59_v3  ;;  %v603_v17 = vld [vmem:[#allocation5 + $0x18] sm:$0xff]  }
  0x26   :  { %70 = vadd.xlane.f32.xlu0 %v751_v4 }
  0x27   :  { %72 = vadd.xlane.f32.xlu1 %v53_v5 }
  0x2a   :  { %86 = vadd.xlane.f32.xlu0 %v753_v6 }
  0x2b   :  { %88 = vadd.xlane.f32.xlu1 %v756_v7 }
  0x2e   :  { %74 = vadd.xlane.f32.xlu0 %v760_v8 }
  0x2f   :  { %76 = vadd.xlane.f32.xlu1 %v762_v9 }
  0x32   :  { %90 = vadd.xlane.f32.xlu0 %v766_v10 }
  0x33   :  { %92 = vadd.xlane.f32.xlu1 %v768_v11 }
  0x36   :  { %78 = vadd.xlane.f32.xlu0 %v772_v12 }
  0x37   :  { %80 = vadd.xlane.f32.xlu1 %v774_v13 }
  0x3a   :  { %94 = vadd.xlane.f32.xlu0 %v778_v14 }
  0x3b   :  { %96 = vadd.xlane.f32.xlu1 %v780_v15 }
  0xa7   :  { %v67_v18 = vpop.xlane.xlu0 %66 }
  0xa8   :  { %v83_v19 = vpop.xlane.xlu1 %82  ;;  %v98_v20 = vmul.f32 0.03125, %v67_v18 }
  0xa9   :  { %v106_v21 = vmul.f32 0.03125, %v83_v19 }
  0xaa   :  { %v114_v22 = vsub.f32 %v50_v0, %v98_v20 }
  0xab   :  { %v122_v23 = vsub.f32 %v58_v1, %v106_v21  ;;  %v69_v24 = vpop.xlane.xlu0 %68 }
  0xac   :  { %v85_v25 = vpop.xlane.xlu1 %84  ;;  %v99_v26 = vmul.f32 0.03125, %v69_v24  ;;  %v789_v28 = vsel %vm132_vm0, %v114_v22, 0.0 }
  0xad   :  { %v107_v27 = vmul.f32 0.03125, %v85_v25  ;;  %v793_v29 = vsel %vm132_vm0, %v122_v23, 0.0  ;;  %v149_v30 = vmul.f32 %v789_v28, %v789_v28  ;;  %v600_v25 = vld [vmem:[#allocation5 + $0x30] sm:$0xff]  }
  0xae   :  { %v115_v31 = vsub.f32 %v51_v2, %v99_v26  ;;  %v157_v35 = vmul.f32 %v793_v29, %v793_v29 }
  0xaf   :  { %v123_v32 = vsub.f32 %v59_v3, %v107_v27  ;;  %165 = vadd.xlane.f32.xlu0 %v149_v30  ;;  %v71_v33 = vpop.xlane.xlu0 %70 }
  0xb0   :  { %v73_v34 = vpop.xlane.xlu1 %72  ;;  %v100_v36 = vmul.f32 0.03125, %v71_v33  ;;  %v801_v38 = vsel %vm132_vm0, %v115_v31, 0.0 }
  0xb1   :  { %v101_v37 = vmul.f32 0.03125, %v73_v34  ;;  %v805_v39 = vsel %vm132_vm0, %v123_v32, 0.0  ;;  %v150_v40 = vmul.f32 %v801_v38, %v801_v38 }
  0xb2   :  { %v116_v41 = vsub.f32 %v751_v4, %v100_v36  ;;  %v158_v45 = vmul.f32 %v805_v39, %v805_v39  ;;  %v601_v36 = vld [vmem:[#allocation5 + $0x28] sm:$0xff]  }
  0xb3   :  { %v117_v42 = vsub.f32 %v53_v5, %v101_v37  ;;  %181 = vadd.xlane.f32.xlu0 %v157_v35  ;;  %167 = vadd.xlane.f32.xlu1 %v150_v40  ;;  %v87_v43 = vpop.xlane.xlu0 %86 }
  0xb4   :  { %v89_v44 = vpop.xlane.xlu1 %88  ;;  %v108_v46 = vmul.f32 0.03125, %v87_v43  ;;  %v814_v48 = vsel %vm132_vm0, %v116_v41, 0.0  ;;  %v604_v43 = vld [vmem:[#allocation5 + $0x10] sm:$0xff]  }
  0xb5   :  { %v109_v47 = vmul.f32 0.03125, %v89_v44  ;;  %v818_v49 = vsel %vm132_vm0, %v117_v42, 0.0  ;;  %v151_v50 = vmul.f32 %v814_v48, %v814_v48  ;;  %v605_v44 = vld [vmem:[#allocation5 + $0x8] sm:$0xff]  }
  0xb6   :  { %v124_v51 = vsub.f32 %v753_v6, %v108_v46  ;;  %v152_v55 = vmul.f32 %v818_v49, %v818_v49 }
  0xb7   :  { %v125_v52 = vsub.f32 %v756_v7, %v109_v47  ;;  %183 = vadd.xlane.f32.xlu1 %v158_v45  ;;  %169 = vadd.xlane.f32.xlu0 %v151_v50  ;;  %v75_v53 = vpop.xlane.xlu0 %74  ;;  %v606_v45 = vld [vmem:[#allocation5] sm:$0xff]  }
  0xb8   :  { %v77_v54 = vpop.xlane.xlu1 %76  ;;  %v102_v56 = vmul.f32 0.03125, %v75_v53  ;;  %v828_v58 = vsel %vm132_vm0, %v124_v51, 0.0 }
  0xb9   :  { %v103_v57 = vmul.f32 0.03125, %v77_v54  ;;  %v832_v59 = vsel %vm132_vm0, %v125_v52, 0.0  ;;  %v159_v60 = vmul.f32 %v828_v58, %v828_v58 }
  0xba   :  { %v118_v61 = vsub.f32 %v760_v8, %v102_v56  ;;  %v160_v1 = vmul.f32 %v832_v59, %v832_v59 }
  0xbb   :  { %v119_v62 = vsub.f32 %v762_v9, %v103_v57  ;;  %171 = vadd.xlane.f32.xlu1 %v152_v55  ;;  %185 = vadd.xlane.f32.xlu0 %v159_v60  ;;  %v91_v63 = vpop.xlane.xlu0 %90  ;;  %v599_v9 = vld [vmem:[#allocation5 + $0x38] sm:$0xff]  }
  0xbc   :  { %v93_v0 = vpop.xlane.xlu1 %92  ;;  %v110_v2 = vmul.f32 0.03125, %v91_v63  ;;  %v842_v4 = vsel %vm132_vm0, %v118_v61, 0.0  ;;  %544 = vmatprep.subr.bf16.mxu0 %v599_v9  ;;  %576 = vmatprep.subr.bf16.mxu1 %v599_v9 }
  0xbd   :  { %v111_v3 = vmul.f32 0.03125, %v93_v0  ;;  %v846_v5 = vsel %vm132_vm0, %v119_v62, 0.0  ;;  %v153_v6 = vmul.f32 %v842_v4, %v842_v4  ;;  %545 = vmatpush3.bf16.msra.mxu0 %v599_v9  ;;  %584 = vmatpush3.bf16.msra.mxu1 %v599_v9 }
  0xbe   :  { %v126_v7 = vsub.f32 %v766_v10, %v110_v2  ;;  %v154_v19 = vmul.f32 %v846_v5, %v846_v5  ;;  %546 = vmatprep.subr.bf16.mxu0 %v600_v25  ;;  %577 = vmatprep.subr.bf16.mxu1 %v600_v25 }
  0xbf   :  { %v127_v8 = vsub.f32 %v768_v11, %v111_v3  ;;  %187 = vadd.xlane.f32.xlu1 %v160_v1  ;;  %173 = vadd.xlane.f32.xlu0 %v153_v6  ;;  %v79_v16 = vpop.xlane.xlu0 %78 }
  0xc0   :  { %v81_v18 = vpop.xlane.xlu1 %80  ;;  %v104_v20 = vmul.f32 0.03125, %v79_v16  ;;  %v856_v22 = vsel %vm132_vm0, %v126_v7, 0.0 }
  0xc1   :  { %v105_v21 = vmul.f32 0.03125, %v81_v18  ;;  %v860_v23 = vsel %vm132_vm0, %v127_v8, 0.0  ;;  %v161_v10 = vmul.f32 %v856_v22, %v856_v22  ;;  %547 = vmatpush3.bf16.msra.mxu0 %v600_v25  ;;  %585 = vmatpush3.bf16.msra.mxu1 %v600_v25 }
  0xc2   :  { %v120_v11 = vsub.f32 %v772_v12, %v104_v20  ;;  %v162_v30 = vmul.f32 %v860_v23, %v860_v23  ;;  %548 = vmatprep.subr.bf16.mxu0 %v601_v36  ;;  %578 = vmatprep.subr.bf16.mxu1 %v601_v36 }
  0xc3   :  { %v121_v24 = vsub.f32 %v774_v13, %v105_v21  ;;  %175 = vadd.xlane.f32.xlu1 %v154_v19  ;;  %189 = vadd.xlane.f32.xlu0 %v161_v10  ;;  %v95_v26 = vpop.xlane.xlu0 %94 }
  0xc4   :  { %v97_v27 = vpop.xlane.xlu1 %96  ;;  %v112_v31 = vmul.f32 0.03125, %v95_v26  ;;  %v870_v33 = vsel %vm132_vm0, %v120_v11, 0.0 }
  0xc5   :  { %v113_v32 = vmul.f32 0.03125, %v97_v27  ;;  %v874_v34 = vsel %vm132_vm0, %v121_v24, 0.0  ;;  %v155_v12 = vmul.f32 %v870_v33, %v870_v33  ;;  %549 = vmatpush3.bf16.msra.mxu0 %v601_v36  ;;  %586 = vmatpush3.bf16.msra.mxu1 %v601_v36  ;;  %v898_v24 = vld [vmem:[%s962_s1] ss:$0 sm:$0xff] }
  0xc6   :  { %v128_v13 = vsub.f32 %v778_v14, %v112_v31  ;;  %v156_v37 = vmul.f32 %v874_v34, %v874_v34 }
  0xc7   :  { %v129_v35 = vsub.f32 %v780_v15, %v113_v32  ;;  %191 = vadd.xlane.f32.xlu1 %v162_v30  ;;  %177 = vadd.xlane.f32.xlu0 %v155_v12  ;;  %v602_v15 = vld [vmem:[#allocation5 + $0x20] sm:$0xff]  }
  0xc8   :  { %v884_v40 = vsel %vm132_vm0, %v128_v13, 0.0  ;;  %550 = vmatprep.subr.bf16.mxu0 %v602_v15  ;;  %579 = vmatprep.subr.bf16.mxu1 %v602_v15 }
  0xc9   :  { %v888_v41 = vsel %vm132_vm0, %v129_v35, 0.0  ;;  %v163_v14 = vmul.f32 %v884_v40, %v884_v40  ;;  %551 = vmatpush3.bf16.msra.mxu0 %v602_v15  ;;  %587 = vmatpush3.bf16.msra.mxu1 %v602_v15 }
  0xca   :  { %v164_v42 = vmul.f32 %v888_v41, %v888_v41  ;;  %552 = vmatprep.subr.bf16.mxu0 %v603_v17  ;;  %580 = vmatprep.subr.bf16.mxu1 %v603_v17 }
  0xcb   :  { %179 = vadd.xlane.f32.xlu1 %v156_v37  ;;  %193 = vadd.xlane.f32.xlu0 %v163_v14 }
  0xcd   :  { %553 = vmatpush3.bf16.msra.mxu0 %v603_v17  ;;  %588 = vmatpush3.bf16.msra.mxu1 %v603_v17 }
  0xce   :  { %554 = vmatprep.subr.bf16.mxu0 %v604_v43  ;;  %581 = vmatprep.subr.bf16.mxu1 %v604_v43 }
  0xcf   :  { %195 = vadd.xlane.f32.xlu1 %v164_v42 }
  0xd1   :  { %555 = vmatpush3.bf16.msra.mxu0 %v604_v43  ;;  %589 = vmatpush3.bf16.msra.mxu1 %v604_v43 }
  0xd2   :  { %556 = vmatprep.subr.bf16.mxu0 %v605_v44  ;;  %582 = vmatprep.subr.bf16.mxu1 %v605_v44 }
  0xd5   :  { %557 = vmatpush3.bf16.msra.mxu0 %v605_v44  ;;  %590 = vmatpush3.bf16.msra.mxu1 %v605_v44 }
  0xd6   :  { %558 = vmatprep.subr.bf16.mxu0 %v606_v45  ;;  %583 = vmatprep.subr.bf16.mxu1 %v606_v45 }
  0xd9   :  { %559 = vmatpush3.bf16.msra.mxu0 %v606_v45  ;;  %591 = vmatpush3.bf16.msra.mxu1 %v606_v45 }
 0x138   :  { %v166_v46 = vpop.xlane.xlu0 %165 }
 0x139   :  { %v197_v47 = vmul.f32 0.03125, %v166_v46 }
 0x13b   :  { %v213_v50 = vadd.f32 1e-05, %v197_v47 }
 0x13c   :  { %v168_v51 = vpop.xlane.xlu1 %167  ;;  %v182_v52 = vpop.xlane.xlu0 %181 }
 0x13d   :  { %607 = vrsqrt.f32 %v213_v50  ;;  %v198_v53 = vmul.f32 0.03125, %v168_v51  ;;  %v205_v54 = vmul.f32 0.03125, %v182_v52 }
 0x13f   :  { %v214_v55 = vadd.f32 1e-05, %v198_v53  ;;  %v221_v56 = vadd.f32 1e-05, %v205_v54 }
 0x140   :  { %v184_v57 = vpop.xlane.xlu1 %183  ;;  %v170_v60 = vpop.xlane.xlu0 %169 }
 0x141   :  { %609 = vrsqrt.f32 %v214_v55  ;;  %v206_v61 = vmul.f32 0.03125, %v184_v57  ;;  %v199_v62 = vmul.f32 0.03125, %v170_v60 }
 0x142   :  { %611 = vrsqrt.f32 %v221_v56 }
 0x143   :  { %v222_v63 = vadd.f32 1e-05, %v206_v61  ;;  %v215_v0 = vadd.f32 1e-05, %v199_v62 }
 0x144   :  { %v172_v1 = vpop.xlane.xlu1 %171  ;;  %v186_v2 = vpop.xlane.xlu0 %185 }
 0x145   :  { %613 = vrsqrt.f32 %v222_v63  ;;  %v200_v3 = vmul.f32 0.03125, %v172_v1  ;;  %v207_v6 = vmul.f32 0.03125, %v186_v2 }
 0x146   :  { %615 = vrsqrt.f32 %v215_v0 }
 0x147   :  { %v216_v7 = vadd.f32 1e-05, %v200_v3  ;;  %v223_v8 = vadd.f32 1e-05, %v207_v6 }
 0x148   :  { %v188_v9 = vpop.xlane.xlu1 %187  ;;  %v174_v16 = vpop.xlane.xlu0 %173 }
 0x149   :  { %617 = vrsqrt.f32 %v216_v7  ;;  %v208_v18 = vmul.f32 0.03125, %v188_v9  ;;  %v201_v19 = vmul.f32 0.03125, %v174_v16 }
 0x14a   :  { %v608_v20 = vpop.eup %607  ;;  %619 = vrsqrt.f32 %v223_v8 }
 0x14b   :  { %v224_v21 = vadd.f32 1e-05, %v208_v18  ;;  %v217_v10 = vadd.f32 1e-05, %v201_v19  ;;  %v245_v11 = vmul.f32 %v608_v20, %v789_v28  ;;  %v905_v28 = vld [vmem:[%s963_s2] ss:$0 sm:$0xff] }
 0x14c   :  { %v176_v25 = vpop.xlane.xlu1 %175  ;;  %v190_v26 = vpop.xlane.xlu0 %189 }
 0x14d   :  { %621 = vrsqrt.f32 %v224_v21  ;;  %v202_v27 = vmul.f32 0.03125, %v176_v25  ;;  %v209_v30 = vmul.f32 0.03125, %v190_v26  ;;  %v268_v32 = vmul.f32 %v898_v24, %v245_v11 }
 0x14e   :  { %v610_v31 = vpop.eup %609  ;;  %623 = vrsqrt.f32 %v217_v10 }
 0x14f   :  { %v612_v12 = vpop.eup %611  ;;  %v218_v13 = vadd.f32 1e-05, %v202_v27  ;;  %v225_v35 = vadd.f32 1e-05, %v209_v30  ;;  %v246_v36 = vmul.f32 %v610_v31, %v801_v38  ;;  %v291_v45 = vadd.f32 %v905_v28, %v268_v32 }
 0x150   :  { %v192_v37 = vpop.xlane.xlu1 %191  ;;  %v178_v14 = vpop.xlane.xlu0 %177  ;;  %v253_v15 = vmul.f32 %v612_v12, %v793_v29 }
 0x151   :  { %625 = vrsqrt.f32 %v218_v13  ;;  %v210_v42 = vmul.f32 0.03125, %v192_v37  ;;  %v203_v17 = vmul.f32 0.03125, %v178_v14  ;;  %v269_v43 = vmul.f32 %v898_v24, %v246_v36 }
 0x152   :  { %v614_v44 = vpop.eup %613  ;;  %627 = vrsqrt.f32 %v225_v35  ;;  %v276_v29 = vmul.f32 %v898_v24, %v253_v15 }
 0x153   :  { %v616_v46 = vpop.eup %615  ;;  %v226_v38 = vadd.f32 1e-05, %v210_v42  ;;  %v219_v47 = vadd.f32 1e-05, %v203_v17  ;;  %v292_v50 = vadd.f32 %v905_v28, %v269_v43  ;;  %v254_v51 = vmul.f32 %v614_v44, %v805_v39 }
 0x154   :  { %v180_v52 = vpop.xlane.xlu1 %179  ;;  %v194_v53 = vpop.xlane.xlu0 %193  ;;  %v247_v54 = vmul.f32 %v616_v46, %v814_v48  ;;  %v299_v3 = vadd.f32 %v905_v28, %v276_v29 }
 0x155   :  { %629 = vrsqrt.f32 %v226_v38  ;;  %v204_v55 = vmul.f32 0.03125, %v180_v52  ;;  %v211_v56 = vmul.f32 0.03125, %v194_v53  ;;  %v307_v57 = vpack.c.bf16 %v292_v50, %v291_v45 }
 0x156   :  { %v618_v60 = vpop.eup %617  ;;  %631 = vrsqrt.f32 %v219_v47  ;;  %v277_v61 = vmul.f32 %v898_v24, %v254_v51  ;;  %v270_v62 = vmul.f32 %v898_v24, %v247_v54 }
 0x157   :  { %v620_v63 = vpop.eup %619  ;;  %v220_v0 = vadd.f32 1e-05, %v204_v55  ;;  %v227_v1 = vadd.f32 1e-05, %v211_v56  ;;  %560 = vmatprep.mubr.bf16.mxu0 %v307_v57  ;;  %v248_v39 = vmul.f32 %v618_v60, %v818_v49  ;;  %v519_v60 = vld [vmem:[%s965_s4] ss:$0 sm:$0xff] }
 0x158   :  { %v196_v2 = vpop.xlane.xlu1 %195  ;;  %v300_v48 = vadd.f32 %v905_v28, %v277_v61  ;;  %v255_v6 = vmul.f32 %v620_v63, %v828_v58  ;;  %v293_v18 = vadd.f32 %v905_v28, %v270_v62  ;;  %s711_s4 = smov [#allocation7]  }
 0x159   :  { %633 = vrsqrt.f32 %v220_v0  ;;  %v212_v7 = vmul.f32 0.03125, %v196_v2  ;;  %v271_v8 = vmul.f32 %v898_v24, %v248_v39  ;;  %s504_s9 = sshll.u32 %s711_s4, 4  ;;  %s505_s9 = int_to_ptr.vmem [resolvable:$true] %s504_s9 }
 0x15a   :  { %v622_v9 = vpop.eup %621  ;;  %635 = vrsqrt.f32 %v227_v1  ;;  %v311_v16 = vpack.c.bf16 %v300_v48, %v299_v3  ;;  %v278_v10 = vmul.f32 %v898_v24, %v255_v6  ;;  %s679_s10 = scalar_lea.vmem %s505_s9, 2048  ;;  %p684_p11 = scmp.lt.s32.totalorder %s505_s9, %s505_s9 }
 0x15b   :  { %v624_v19 = vpop.eup %623  ;;  %v228_v20 = vadd.f32 1e-05, %v212_v7  ;;  %v294_v49 = vadd.f32 %v905_v28, %v271_v8  ;;  %v256_v21 = vmul.f32 %v622_v9, %v832_v59  ;;  %p680_p10 = scmp.ne.s32.totalorder %s505_s9, %s679_s10  ;;  %p685_p12 = scmp.lt.s32.totalorder %s679_s10, %s679_s10 }
 0x15c   :  { %568 = vmatprep.mubr.bf16.mxu1 %v311_v16  ;;  %v249_v58 = vmul.f32 %v624_v19, %v842_v4  ;;  %v301_v30 = vadd.f32 %v905_v28, %v278_v10 }
 0x15d   :  { %637 = vrsqrt.f32 %v228_v20  ;;  %v308_v11 = vpack.c.bf16 %v294_v49, %v293_v18  ;;  %v279_v25 = vmul.f32 %v898_v24, %v256_v21  ;;  %p686_p13 = por %p685_p12, %p684_p11 }
 0x15e   :  { %v626_v26 = vpop.eup %625  ;;  %v272_v59 = vmul.f32 %v898_v24, %v249_v58 }
 0x15f   :  { %v628_v27 = vpop.eup %627  ;;  %561 = vmatmul.mubr.bf16.vlgmr.msra.gmra.mxu0 %v308_v11  ;;  %v302_v31 = vadd.f32 %v905_v28, %v279_v25  ;;  %v250_v32 = vmul.f32 %v626_v26, %v846_v5  ;;  %p687_p0 = pnand %p686_p13, %p680_p10 }
 0x160   :  { %v257_v12 = vmul.f32 %v628_v27, %v856_v22  ;;  %v295_v37 = vadd.f32 %v905_v28, %v272_v59 }
 0x161   :  { %v312_v13 = vpack.c.bf16 %v302_v31, %v301_v30  ;;  %v273_v4 = vmul.f32 %v898_v24, %v250_v32 }
 0x162   :  { %v630_v35 = vpop.eup %629  ;;  %v280_v42 = vmul.f32 %v898_v24, %v257_v12 }
 0x163   :  { %v632_v36 = vpop.eup %631  ;;  %569 = vmatmul.mubr.bf16.vlgmr.msra.gmra.mxu1 %v312_v13  ;;  %v296_v14 = vadd.f32 %v905_v28, %v273_v4  ;;  %v258_v15 = vmul.f32 %v630_v35, %v860_v23 }
 0x164   :  { %v251_v5 = vmul.f32 %v632_v36, %v870_v33  ;;  %v303_v45 = vadd.f32 %v905_v28, %v280_v42 }
 0x165   :  { %v309_v17 = vpack.c.bf16 %v296_v14, %v295_v37  ;;  %v281_v43 = vmul.f32 %v898_v24, %v258_v15 }
 0x166   :  { %v634_v22 = vpop.eup %633  ;;  %v274_v47 = vmul.f32 %v898_v24, %v251_v5 }
 0x167   :  { %v636_v44 = vpop.eup %635  ;;  %564 = vmatprep.mubr.bf16.mxu0 %v309_v17  ;;  %v304_v46 = vadd.f32 %v905_v28, %v281_v43  ;;  %v252_v38 = vmul.f32 %v634_v22, %v874_v34 }
 0x168   :  { %v259_v23 = vmul.f32 %v636_v44, %v884_v40  ;;  %v297_v52 = vadd.f32 %v905_v28, %v274_v47 }
 0x169   :  { %v313_v50 = vpack.c.bf16 %v304_v46, %v303_v45  ;;  %v275_v51 = vmul.f32 %v898_v24, %v252_v38 }
 0x16a   :  { %v638_v33 = vpop.eup %637  ;;  %v282_v54 = vmul.f32 %v898_v24, %v259_v23 }
 0x16b   :  { %572 = vmatprep.mubr.bf16.mxu1 %v313_v50  ;;  %v298_v53 = vadd.f32 %v905_v28, %v275_v51  ;;  %v260_v29 = vmul.f32 %v638_v33, %v888_v41 }
 0x16c   :  { %v305_v56 = vadd.f32 %v905_v28, %v282_v54 }
 0x16d   :  { %v310_v55 = vpack.c.bf16 %v298_v53, %v297_v52  ;;  %v283_v34 = vmul.f32 %v898_v24, %v260_v29 }
 0x16f   :  { %565 = vmatmul.mubr.bf16.gmra.mxu0 %v310_v55  ;;  %v306_v40 = vadd.f32 %v905_v28, %v283_v34 }
 0x171   :  { %v314_v57 = vpack.c.bf16 %v306_v40, %v305_v56 }
 0x173   :  { %573 = vmatmul.mubr.bf16.gmra.mxu1 %v314_v57 }
 0x21f   :  { %v562_v61 = vpop.f32.mrf.mxu0 }
 0x220   :  { %v429_v62 = vadd.f32 %v562_v61, %v519_v60 }
 0x221   :  { %v420_v63 = vpop.f32.mrf.mxu0 }
 0x222   :  { %485 = vst [vmem:[#allocation7 + $0x10] sm:$0xff] %v429_v62  ;;  %v421_v41 = vadd.f32 %v519_v60, %v420_v63 }
 0x223   :  { %v563_v0 = vpop.f32.mrf.mxu0  ;;  %v570_v1 = vpop.f32.mrf.mxu1 }
 0x224   :  { %483 = vst [vmem:[#allocation7] sm:$0xff] %v421_v41  ;;  %v432_v24 = vadd.f32 %v563_v0, %v519_v60  ;;  %v461_v39 = vadd.f32 %v570_v1, %v519_v60 }
 0x225   :  { %v423_v2 = vpop.f32.mrf.mxu0  ;;  %v452_v3 = vpop.f32.mrf.mxu1 }
 0x226   :  { %486 = vst [vmem:[#allocation7 + $0x18] sm:$0xff] %v432_v24  ;;  %493 = vst [vmem:[#allocation7 + $0x50] sm:$0xff] %v461_v39  ;;  %v424_v28 = vadd.f32 %v519_v60, %v423_v2  ;;  %v453_v48 = vadd.f32 %v519_v60, %v452_v3 }
 0x227   :  { %v571_v6 = vpop.f32.mrf.mxu1 }
 0x228   :  { %484 = vst [vmem:[#allocation7 + $0x8] sm:$0xff] %v424_v28  ;;  %491 = vst [vmem:[#allocation7 + $0x40] sm:$0xff] %v453_v48  ;;  %v464_v7 = vadd.f32 %v571_v6, %v519_v60 }
 0x229   :  { %v455_v8 = vpop.f32.mrf.mxu1 }
 0x22a   :  { %494 = vst [vmem:[#allocation7 + $0x58] sm:$0xff] %v464_v7  ;;  %v456_v9 = vadd.f32 %v519_v60, %v455_v8 }
 0x22c   :  { %492 = vst [vmem:[#allocation7 + $0x48] sm:$0xff] %v456_v9 }
 0x22f   :  { %v566_v16 = vpop.f32.mrf.mxu0 }
 0x230   :  { %v445_v18 = vadd.f32 %v566_v16, %v519_v60 }
 0x231   :  { %v436_v19 = vpop.f32.mrf.mxu0 }
 0x232   :  { %489 = vst [vmem:[#allocation7 + $0x30] sm:$0xff] %v445_v18  ;;  %v437_v20 = vadd.f32 %v519_v60, %v436_v19 }
 0x233   :  { %v567_v49 = vpop.f32.mrf.mxu0  ;;  %v574_v21 = vpop.f32.mrf.mxu1 }
 0x234   :  { %487 = vst [vmem:[#allocation7 + $0x20] sm:$0xff] %v437_v20  ;;  %v448_v10 = vadd.f32 %v567_v49, %v519_v60  ;;  %v477_v58 = vadd.f32 %v574_v21, %v519_v60 }
 0x235   :  { %v439_v11 = vpop.f32.mrf.mxu0  ;;  %v468_v25 = vpop.f32.mrf.mxu1 }
 0x236   :  { %490 = vst [vmem:[#allocation7 + $0x38] sm:$0xff] %v448_v10  ;;  %497 = vst [vmem:[#allocation7 + $0x70] sm:$0xff] %v477_v58  ;;  %v440_v26 = vadd.f32 %v519_v60, %v439_v11  ;;  %v469_v27 = vadd.f32 %v519_v60, %v468_v25 }
 0x237   :  { %v575_v30 = vpop.f32.mrf.mxu1 }
 0x238   :  { %488 = vst [vmem:[#allocation7 + $0x28] sm:$0xff] %v440_v26  ;;  %495 = vst [vmem:[#allocation7 + $0x60] sm:$0xff] %v469_v27  ;;  %v480_v31 = vadd.f32 %v575_v30, %v519_v60 }
 0x239   :  { %v471_v32 = vpop.f32.mrf.mxu1 }
 0x23a   :  { %498 = vst [vmem:[#allocation7 + $0x78] sm:$0xff] %v480_v31  ;;  %v472_v59 = vadd.f32 %v519_v60, %v471_v32 }
 0x23c   :  { %496 = vst [vmem:[#allocation7 + $0x68] sm:$0xff] %v472_v59 }
 0x23d   :  { %690 = shalt.err (!%p687_p0)
}
 0x23e   :  { %510 = dma.vmem_to_hbm [thread:$0]  %s505_s9, 2048, %s966_s5, [#allocation4], %s706_s21, %s706_s21, %s707_s22  }
 0x23f   :  { %703 = dma.done.wait [#allocation4], 2048  }
 0x240   :  { %704 = vsyncadd [#allocation4], 4294965248 }
 0x241   :  { %514 = vsyncpa [#allocation3], 1 }
 0x242   :  { %515 = vsyncpa [#allocation6], 1 }
 0x243   :  { %516 = vsyncpa [#allocation4], 1 }

</bundles_post_ra>
